<compile_context>
chip_gen: v6e
topology: v6e:2x2x1
jax: 0.10.0
libtpu: 0.0.40
codegen_flags: <defaults>
</compile_context>

<pallas_src>
import jax
import jax.numpy as jnp
from jax.experimental import pallas as pl
from jax.experimental.pallas import tpu as pltpu

# ---------------- model dimensions (small, deterministic) -------------------
N_PHONEMES = 1000
N_SPEAKERS = 100
ENCODER_DIM = 32          # encoder_dim
Z_CHANNELS = 32           # z_channels
S_CHANNELS = 32           # s_channels
COND_DIM = Z_CHANNELS + S_CHANNELS
HIDDEN = 256              # Decoder(256, ...) hidden width
MEL = 80                  # mel bins
OUT_W = 128               # lane-dense padded output: cols 0..79 mel, col 80 duration

B = 2                     # batch
T = 16                    # phoneme sequence length
M = B * T                 # rows fed to the MXU (batch folded into M)


# ------------------------------ Pallas kernel -------------------------------
def eets_kernel(x_ref, bias_enc_ref, bias_dec_ref,
                w_enc_ref, w_dur_ref, b_dur_ref,
                w_dec_ref, w_out_ref, b_out_ref,
                out_ref):
    # x_ref:        (M, ENCODER_DIM)  bf16   phoneme embeddings, batch folded in
    # bias_enc_ref: (M, HIDDEN)       f32    b_enc + cond @ w_cz (precomputed)
    # bias_dec_ref: (M, HIDDEN)       f32    b_dec + cond @ w_dz (precomputed)
    # w_out_ref:    (HIDDEN, 128)     bf16   cols 0..79 = mel proj, rest zero
    # out_ref:      (M, 128)          f32    cols 0..79 mel, col 80 duration

    # ---- Encoder: per-timestep linear + conditioning bias + ReLU -----------
    h = jnp.dot(x_ref[...], w_enc_ref[...],
                preferred_element_type=jnp.float32)                # (M, H)
    h = jnp.maximum(h + bias_enc_ref[...], 0.0)

    # ---- Duration head: 1-wide linear as VPU mul + lane reduce (f32),
    #      numerically-safe softplus -----------------------------------------
    dur = jnp.sum(h * w_dur_ref[...], axis=-1, keepdims=True) + b_dur_ref[...]
    dur = jnp.maximum(dur, 0.0) + jnp.log1p(jnp.exp(-jnp.abs(dur)))  # (M, 1)

    # ---- Decoder: conditioned linear(H -> H) + ReLU, projection to MEL -----
    d = jnp.dot(h.astype(jnp.bfloat16), w_dec_ref[...],
                preferred_element_type=jnp.float32)                # (M, H)
    d = jnp.maximum(d + bias_dec_ref[...], 0.0)
    y = jnp.dot(d.astype(jnp.bfloat16), w_out_ref[...],
                preferred_element_type=jnp.float32) + b_out_ref[...]  # (M, 128)

    # Merge duration into lane MEL -> single unmasked lane-dense store.
    lane = jax.lax.broadcasted_iota(jnp.int32, (y.shape[0], OUT_W), 1)
    out_ref[...] = jnp.where(lane == MEL, dur, y)


# ------------------------------ params ---------------------------------------
def init_params(key):
    ks = jax.random.split(key, 8)
    scale = 0.02
    w_out = jax.random.normal(ks[6], (HIDDEN, MEL), jnp.float32) * scale
    w_out_pad = jnp.zeros((HIDDEN, OUT_W), jnp.float32).at[:, :MEL].set(w_out)
    return {
        "phoneme_emb": jax.random.normal(ks[0], (N_PHONEMES, ENCODER_DIM), jnp.float32) * scale,
        "speaker_emb": jax.random.normal(ks[1], (N_SPEAKERS, S_CHANNELS), jnp.float32) * scale,
        # encoder (matmul weights stored bf16, biases / small heads f32)
        "w_enc": (jax.random.normal(ks[2], (ENCODER_DIM, HIDDEN), jnp.float32) * scale
                  ).astype(jnp.bfloat16),
        "b_enc": jnp.zeros((1, HIDDEN), jnp.float32),
        # conditioning: [w_cz | w_dz] fused into one (COND_DIM, 2H) matrix (hoisted matmul)
        "w_cond": jax.random.normal(ks[3], (COND_DIM, 2 * HIDDEN), jnp.float32) * scale,
        # duration head (kept f32: exp-sensitive path)
        "w_dur": jax.random.normal(ks[4], (1, HIDDEN), jnp.float32) * scale,
        "b_dur": jnp.zeros((1, 1), jnp.float32),
        # decoder
        "w_dec": (jax.random.normal(ks[5], (HIDDEN, HIDDEN), jnp.float32) * scale
                  ).astype(jnp.bfloat16),
        "b_dec": jnp.zeros((1, HIDDEN), jnp.float32),
        "w_out": w_out_pad.astype(jnp.bfloat16),        # (HIDDEN, 128), cols >= 80 zero
        "b_out": jnp.zeros((1, OUT_W), jnp.float32),
    }


# ------------------------------ wrapper ---------------------------------------
@jax.jit
def eets_forward(inputs, z, speakers, params):
    """inputs: (B, T) int32 phoneme ids; z: (B, Z_CHANNELS) f32;
       speakers: (B, 1) int32 speaker ids."""
    b, t = inputs.shape

    # Embedding gathers + hoisted conditioning matmul stay in plain-JAX glue.
    enc_in = jnp.take(params["phoneme_emb"], inputs, axis=0)         # (B, T, E)
    spk = jnp.take(params["speaker_emb"], speakers[:, 0], axis=0)    # (B, S)  == .squeeze(1)
    cond = jnp.concatenate([z, spk], axis=1)                         # (B, Z+S) == z_inputs

    cond_bias = jnp.dot(cond, params["w_cond"])                      # (B, 2H)  tiny XLA matmul
    bias_enc = params["b_enc"] + cond_bias[:, :HIDDEN]               # (B, H)
    bias_dec = params["b_dec"] + cond_bias[:, HIDDEN:]               # (B, H)
    bias_enc = jnp.broadcast_to(bias_enc[:, None, :], (b, t, HIDDEN)).reshape(b * t, HIDDEN)
    bias_dec = jnp.broadcast_to(bias_dec[:, None, :], (b, t, HIDDEN)).reshape(b * t, HIDDEN)

    x_flat = enc_in.reshape(b * t, ENCODER_DIM).astype(jnp.bfloat16)  # (M, E)

    vmem = pl.BlockSpec(memory_space=pltpu.MemorySpace.VMEM)
    out = pl.pallas_call(
        eets_kernel,
        out_shape=jax.ShapeDtypeStruct((b * t, OUT_W), jnp.float32),
        in_specs=[vmem] * 9,
        out_specs=vmem,
    )(x_flat, bias_enc, bias_dec,
      params["w_enc"], params["w_dur"], params["b_dur"],
      params["w_dec"], params["w_out"], params["b_out"])

    mel = out[:, :MEL].reshape(b, t, MEL)
    outputs = jnp.transpose(mel, (0, 2, 1))       # (B, MEL, T) channel-first like PyTorch
    duration = out[:, MEL].reshape(b, t)          # (B, T)
    return outputs, duration


if __name__ == "__main__":
    key = jax.random.PRNGKey(0)
    k_par, k_in, k_z, k_spk = jax.random.split(key, 4)

    params = init_params(k_par)
    inputs = jax.random.randint(k_in, (B, T), 0, N_PHONEMES, dtype=jnp.int32)
    z = jax.random.normal(k_z, (B, Z_CHANNELS), jnp.float32)
    speakers = jax.random.randint(k_spk, (B, 1), 0, N_SPEAKERS, dtype=jnp.int32)

    outputs, duration = eets_forward(inputs, z, speakers, params)
    jax.block_until_ready((outputs, duration))

    assert outputs.shape == (B, MEL, T)
    assert duration.shape == (B, T)
    assert bool(jnp.all(duration >= 0.0))   # softplus output is nonnegative
    print("KERNEL_OK")
</pallas_src>

<mosaic_0001>
module attributes {stable_mosaic.version = 11 : i64} {
  func.func @eets_kernel(%arg0: memref<32x32xbf16, #tpu.memory_space<vmem>>, %arg1: memref<32x256xf32, #tpu.memory_space<vmem>>, %arg2: memref<32x256xf32, #tpu.memory_space<vmem>>, %arg3: memref<32x256xbf16, #tpu.memory_space<vmem>>, %arg4: memref<1x256xf32, #tpu.memory_space<vmem>>, %arg5: memref<1x1xf32, #tpu.memory_space<vmem>>, %arg6: memref<256x256xbf16, #tpu.memory_space<vmem>>, %arg7: memref<256x128xbf16, #tpu.memory_space<vmem>>, %arg8: memref<1x128xf32, #tpu.memory_space<vmem>>, %arg9: memref<32x128xf32, #tpu.memory_space<vmem>>) attributes {dimension_semantics = [], scalar_prefetch = 0 : i64, scratch_operands = 0 : i64, tpu.core_type = #tpu.core_type<tc>} {
    %c0 = arith.constant 0 : index
    %c0_0 = arith.constant 0 : index
    %0 = vector.load %arg0[%c0, %c0_0] : memref<32x32xbf16, #tpu.memory_space<vmem>>, vector<32x32xbf16>
    %c0_1 = arith.constant 0 : index
    %c0_2 = arith.constant 0 : index
    %1 = vector.load %arg3[%c0_1, %c0_2] : memref<32x256xbf16, #tpu.memory_space<vmem>>, vector<32x256xbf16>
    %cst = arith.constant dense<0.000000e+00> : vector<32x256xf32>
    %2 = tpu.matmul %0, %1, %cst {dimension_numbers = #tpu.dot_dimension_numbers<[1], [0], [0], [1], [0, 0, 1, 1], [], []>} : vector<32x32xbf16>, vector<32x256xbf16>, vector<32x256xf32> -> vector<32x256xf32>
    %c0_3 = arith.constant 0 : index
    %c0_4 = arith.constant 0 : index
    %3 = vector.load %arg1[%c0_3, %c0_4] : memref<32x256xf32, #tpu.memory_space<vmem>>, vector<32x256xf32>
    %4 = arith.addf %2, %3 : vector<32x256xf32>
    %cst_5 = arith.constant 0.000000e+00 : f32
    %5 = vector.broadcast %cst_5 : f32 to vector<32x256xf32>
    %6 = arith.maximumf %4, %5 : vector<32x256xf32>
    %c0_6 = arith.constant 0 : index
    %c0_7 = arith.constant 0 : index
    %7 = vector.load %arg4[%c0_6, %c0_7] : memref<1x256xf32, #tpu.memory_space<vmem>>, vector<1x256xf32>
    %8 = vector.broadcast %7 : vector<1x256xf32> to vector<32x256xf32>
    %9 = arith.mulf %6, %8 : vector<32x256xf32>
    %cst_8 = arith.constant dense<0.000000e+00> : vector<32xf32>
    %10 = vector.multi_reduction <add>, %9, %cst_8 [1] : vector<32x256xf32> to vector<32xf32>
    %11 = vector.shape_cast %10 : vector<32xf32> to vector<32x1xf32>
    %c0_9 = arith.constant 0 : index
    %c0_10 = arith.constant 0 : index
    %12 = vector.load %arg5[%c0_9, %c0_10] : memref<1x1xf32, #tpu.memory_space<vmem>>, vector<1x1xf32>
    %13 = vector.broadcast %12 : vector<1x1xf32> to vector<32x1xf32>
    %14 = arith.addf %11, %13 : vector<32x1xf32>
    %cst_11 = arith.constant 0.000000e+00 : f32
    %15 = vector.broadcast %cst_11 : f32 to vector<32x1xf32>
    %16 = arith.maximumf %14, %15 : vector<32x1xf32>
    %17 = math.absf %14 : vector<32x1xf32>
    %cst_12 = arith.constant 0.000000e+00 : f32
    %18 = vector.broadcast %cst_12 : f32 to vector<32x1xf32>
    %19 = arith.subf %18, %17 : vector<32x1xf32>
    %20 = math.exp %19 : vector<32x1xf32>
    %21 = math.log1p %20 : vector<32x1xf32>
    %22 = arith.addf %16, %21 : vector<32x1xf32>
    %23 = arith.truncf %6 : vector<32x256xf32> to vector<32x256xbf16>
    %c0_13 = arith.constant 0 : index
    %c0_14 = arith.constant 0 : index
    %24 = vector.load %arg6[%c0_13, %c0_14] : memref<256x256xbf16, #tpu.memory_space<vmem>>, vector<256x256xbf16>
    %cst_15 = arith.constant dense<0.000000e+00> : vector<32x256xf32>
    %25 = tpu.matmul %23, %24, %cst_15 {dimension_numbers = #tpu.dot_dimension_numbers<[1], [0], [0], [1], [0, 0, 1, 1], [], []>} : vector<32x256xbf16>, vector<256x256xbf16>, vector<32x256xf32> -> vector<32x256xf32>
    %c0_16 = arith.constant 0 : index
    %c0_17 = arith.constant 0 : index
    %26 = vector.load %arg2[%c0_16, %c0_17] : memref<32x256xf32, #tpu.memory_space<vmem>>, vector<32x256xf32>
    %27 = arith.addf %25, %26 : vector<32x256xf32>
    %cst_18 = arith.constant 0.000000e+00 : f32
    %28 = vector.broadcast %cst_18 : f32 to vector<32x256xf32>
    %29 = arith.maximumf %27, %28 : vector<32x256xf32>
    %30 = arith.truncf %29 : vector<32x256xf32> to vector<32x256xbf16>
    %c0_19 = arith.constant 0 : index
    %c0_20 = arith.constant 0 : index
    %31 = vector.load %arg7[%c0_19, %c0_20] : memref<256x128xbf16, #tpu.memory_space<vmem>>, vector<256x128xbf16>
    %cst_21 = arith.constant dense<0.000000e+00> : vector<32x128xf32>
    %32 = tpu.matmul %30, %31, %cst_21 {dimension_numbers = #tpu.dot_dimension_numbers<[1], [0], [0], [1], [0, 0, 1, 1], [], []>} : vector<32x256xbf16>, vector<256x128xbf16>, vector<32x128xf32> -> vector<32x128xf32>
    %c0_22 = arith.constant 0 : index
    %c0_23 = arith.constant 0 : index
    %33 = vector.load %arg8[%c0_22, %c0_23] : memref<1x128xf32, #tpu.memory_space<vmem>>, vector<1x128xf32>
    %34 = vector.broadcast %33 : vector<1x128xf32> to vector<32x128xf32>
    %35 = arith.addf %32, %34 : vector<32x128xf32>
    %36 = tpu.iota {dimensions = array<i32: 1>} : vector<32x128xi32>
    %c80_i32 = arith.constant 80 : i32
    %37 = vector.broadcast %c80_i32 : i32 to vector<32x128xi32>
    %38 = arith.cmpi eq, %36, %37 : vector<32x128xi32>
    %39 = vector.shape_cast %22 : vector<32x1xf32> to vector<32x1xf32>
    %40 = vector.broadcast %39 : vector<32x1xf32> to vector<32x128xf32>
    %41 = arith.select %38, %40, %35 : vector<32x128xi1>, vector<32x128xf32>
    %c0_24 = arith.constant 0 : index
    %c0_25 = arith.constant 0 : index
    %42 = vector.load %arg9[%c0_24, %c0_25] : memref<32x128xf32, #tpu.memory_space<vmem>>, vector<32x128xf32>
    tpu.vector_store %arg9[%c0_24, %c0_25], %41 {strides = array<i32>} : memref<32x128xf32, #tpu.memory_space<vmem>>, vector<32x128xf32>,
    return
  }
}

</mosaic_0001>

<bundles_post_ra>
// kernel: squeeze.3
= control target key start
LH: loop header
LB: loop body
LE: loop exit
PB: predicated region body
PF: predicated region fallthrough
CT: control target
= control target key end

     0   :  { %s77_s0 = inlined_call_operand.vmem [shape: f32[32], index: 0, kind: input, shape index: {}]   ;;  %s78_s1 = inlined_call_operand.hbm [shape: f32[2,16], index: 1, kind: output, shape index: {}]  }
   0x1   :  { %v6_v0 = vld [vmem:[%s77_s0] sm:$0x1] }
   0x2   :  { %2 = vsyncpa [#allocation1], 0  ;;  %7 = vst [vmem:[#allocation3] sm:$0x1] %v6_v0  ;;  %vm9_vm0 = vcmask 130048   ;;  %s59_s0 = smov 112  }
   0x3   :  { %s60_s8 = smov [#allocation0]  }
   0x4   :  { %s29_s9 = sshll.u32 %s60_s8, 4  ;;  %s30_s9 = int_to_ptr.vmem [resolvable:$true] %s29_s9 }
   0x5   :  { %s37_s10 = scalar_lea.vmem %s30_s9, 32  ;;  %p42_p1 = scmp.lt.s32.totalorder %s30_s9, %s30_s9 }
   0x6   :  { %p38_p0 = scmp.ne.s32.totalorder %s30_s9, %s37_s10  ;;  %p43_p2 = scmp.lt.s32.totalorder %s37_s10, %s37_s10 }
   0x8   :  { %p44_p3 = por %p43_p2, %p42_p1 }
   0x9   :  { %v11_v1 = vld [vmem:[#allocation3] sm:$0x1]  }
   0xa   :  { %v8_v2 = vld [vmem:[#allocation3] sm:$0x1]   ;;  %12 = vrot.lane.b32.xlu0 %v11_v1, %s59_s0  ;;  %p45_p4 = pnand %p44_p3, %p38_p0 }
   0xb   :  { %10 = vst.msk [vmem:[#allocation2] sm:$0x1] %vm9_vm0, %v8_v2  }
  0x7c   :  { %v13_v3 = vpop.permute.xlu0 %12  }
  0x7d   :  { %16 = vst.msk [vmem:[#allocation2 + $0x1] sm:$0x1] %vm9_vm0, %v13_v3  }
  0x84   :  { %v21_v4 = vld [vmem:[#allocation2] sm:$0x3] }
  0x85   :  { %24 = vst [vmem:[#allocation0] sm:$0x3] %v21_v4 }
  0x86   :  { %48 = shalt.err (!%p45_p4)
}
  0x87   :  { %32 = dma.vmem_to_hbm [thread:$0]  %s30_s9, 32, %s78_s1, [#allocation1]  }
  0x88   :  { %57 = dma.done.wait [#allocation1], 32  }
  0x89   :  { %58 = vsyncadd [#allocation1], 4294967264 }
  0x8a   :  { %34 = vsyncpa [#allocation1], 1 }

// kernel: eets_forward.1
= control target key start
LH: loop header
LB: loop body
LE: loop exit
PB: predicated region body
PF: predicated region fallthrough
CT: control target
= control target key end

     0   :  { %v917_v1 = vmov 0   ;;  %vm81_vm0 = vcmask 261120   ;;  %v151_v40 = vlaneseq  ;;  %s1215_s3 = inlined_call_operand.vmem [shape: bf16[32,256], index: 3, kind: input, shape index: {}]   ;;  %s1216_s0 = inlined_call_operand.vmem [shape: bf16[32,32], index: 0, kind: input, shape index: {}]   ;;  %s1217_s6 = inlined_call_operand.vmem [shape: bf16[256,256], index: 6, kind: input, shape index: {}]   ;;  %s1218_s5 = inlined_call_operand.<no memory space> [shape: f32[1,1], index: 5, kind: input, shape index: {}]   ;;  %s1219_s1 = inlined_call_operand.vmem [shape: f32[32,256], index: 1, kind: input, shape index: {}]   ;;  %s1220_s4 = inlined_call_operand.vmem [shape: f32[1,256], index: 4, kind: input, shape index: {}]   ;;  %s1221_s7 = inlined_call_operand.vmem [shape: bf16[256,128], index: 7, kind: input, shape index: {}]   ;;  %s1222_s2 = inlined_call_operand.vmem [shape: f32[32,256], index: 2, kind: input, shape index: {}]   ;;  %s1223_s8 = inlined_call_operand.vmem [shape: f32[1,128], index: 8, kind: input, shape index: {}]   ;;  %s1224_s9 = inlined_call_operand.vmem [shape: f32[32,128], index: 9, kind: output, shape index: {}]  }
   0x1   :  { %v829_v0 = vld [vmem:[%s1215_s3 + $0x14] ss:$8 sps:$4 sm:$0xff]   ;;  %120 = vmatprep.mubr.bf16.mxu0 %v917_v1  ;;  %827 = vset.pattern.permute.xlu0 %v917_v1  ;;  %v831_v2 = vld [vmem:[%s1215_s3 + $0x10] ss:$8 sps:$4 sm:$0xff]   ;;  %v832_v3 = vld [vmem:[%s1215_s3 + $0x4] ss:$8 sps:$4 sm:$0xff]   ;;  %v14_v39 = vstv %s1218_s5 }
   0x2   :  { %828 = vset.pattern.permute.xlu1 %v917_v1  ;;  %100 = vmatprep.subr.bf16.mxu0 %v829_v0  ;;  %v834_v4 = vld [vmem:[%s1215_s3] ss:$8 sps:$4 sm:$0xff]   ;;  %v837_v6 = vld [vmem:[%s1217_s6 + $0x74] ss:$8 sps:$4 sm:$0xff]   ;;  %v839_v7 = vld [vmem:[%s1217_s6 + $0x70] ss:$8 sps:$4 sm:$0xff]  }
   0x3   :  { %101 = vmatpush1.bf16.msra.mxu0 %v831_v2  ;;  %v835_v5 = vld [vmem:[%s1216_s0] sm:$0xff]   ;;  %456 = vmatprep.subr.bf16.mxu1 %v837_v6  ;;  %v843_v10 = vld [vmem:[%s1217_s6 + $0x54] ss:$8 sps:$4 sm:$0xff]   ;;  %v845_v11 = vld [vmem:[%s1217_s6 + $0x50] ss:$8 sps:$4 sm:$0xff]   ;;  %v152_v41 = vshrl.u32 %v151_v40, 7 }
   0x4   :  { %102 = vmatprep.subr.bf16.mxu0 %v832_v3  ;;  %v840_v8 = vld [vmem:[%s1217_s6 + $0x64] ss:$8 sps:$4 sm:$0xff]   ;;  %457 = vmatpush1.bf16.msra.mxu1 %v839_v7  ;;  %v842_v9 = vld [vmem:[%s1217_s6 + $0x60] ss:$8 sps:$4 sm:$0xff]   ;;  %v849_v15 = vld [vmem:[%s1217_s6 + $0x34] ss:$8 sps:$4 sm:$0xff]  }
   0x5   :  { %458 = vmatprep.subr.bf16.mxu1 %v840_v8  ;;  %v846_v12 = vld [vmem:[%s1217_s6 + $0x44] ss:$8 sps:$4 sm:$0xff]   ;;  %v848_v14 = vld [vmem:[%s1217_s6 + $0x40] ss:$8 sps:$4 sm:$0xff]   ;;  %v851_v16 = vld [vmem:[%s1217_s6 + $0x30] ss:$8 sps:$4 sm:$0xff]  }
   0x6   :  { %v836_v13 = vld [vmem:[%s1216_s0 + $0x8] sm:$0xff]   ;;  %v855_v19 = vld [vmem:[%s1217_s6 + $0x14] ss:$8 sps:$4 sm:$0xff]   ;;  %v857_v20 = vld [vmem:[%s1217_s6 + $0x10] ss:$8 sps:$4 sm:$0xff]   ;;  %v157_v43 = vsub.s32 1, %v152_v41 }
   0x7   :  { %103 = vmatpush1.bf16.msra.mxu0 %v834_v4  ;;  %v852_v17 = vld [vmem:[%s1217_s6 + $0x24] ss:$8 sps:$4 sm:$0xff]   ;;  %v854_v18 = vld [vmem:[%s1217_s6 + $0x20] ss:$8 sps:$4 sm:$0xff]   ;;  %v861_v23 = vld [vmem:[%s1217_s6 + $0xf4] ss:$8 sps:$4 sm:$0xff]  }
   0x8   :  { %459 = vmatpush1.bf16.msra.mxu1 %v842_v9  ;;  %v858_v21 = vld [vmem:[%s1217_s6 + $0x4] ss:$8 sps:$4 sm:$0xff]   ;;  %v860_v22 = vld [vmem:[%s1217_s6] ss:$8 sps:$4 sm:$0xff]   ;;  %v863_v24 = vld [vmem:[%s1217_s6 + $0xf0] ss:$8 sps:$4 sm:$0xff]  }
   0x9   :  { %460 = vmatprep.subr.bf16.mxu1 %v843_v10  ;;  %v864_v25 = vld [vmem:[%s1217_s6 + $0xe4] ss:$8 sps:$4 sm:$0xff]   ;;  %v866_v26 = vld [vmem:[%s1217_s6 + $0xe0] ss:$8 sps:$4 sm:$0xff]   ;;  %v867_v27 = vld [vmem:[%s1217_s6 + $0xd4] ss:$8 sps:$4 sm:$0xff]  }
   0xa   :  { %746 = vmatmul.mubr.msk.bf16.vlgmr.msra.gmra.mxu0 %vm81_vm0, %v835_v5  ;;  %v869_v28 = vld [vmem:[%s1217_s6 + $0xd0] ss:$8 sps:$4 sm:$0xff]   ;;  %v870_v29 = vld [vmem:[%s1217_s6 + $0xc4] ss:$8 sps:$4 sm:$0xff]   ;;  %v872_v30 = vld [vmem:[%s1217_s6 + $0xc0] ss:$8 sps:$4 sm:$0xff]  }
   0xb   :  { %130 = vmatprep.mubr.bf16.mxu0 %v917_v1  ;;  %v873_v31 = vld [vmem:[%s1217_s6 + $0xb4] ss:$8 sps:$4 sm:$0xff]   ;;  %v875_v32 = vld [vmem:[%s1217_s6 + $0xb0] ss:$8 sps:$4 sm:$0xff]   ;;  %v876_v33 = vld [vmem:[%s1217_s6 + $0xa4] ss:$8 sps:$4 sm:$0xff]  }
   0xc   :  { %461 = vmatpush1.bf16.msra.mxu1 %v845_v11  ;;  %v878_v34 = vld [vmem:[%s1217_s6 + $0xa0] ss:$8 sps:$4 sm:$0xff]   ;;  %v879_v35 = vld [vmem:[%s1217_s6 + $0x94] ss:$8 sps:$4 sm:$0xff]   ;;  %v881_v36 = vld [vmem:[%s1217_s6 + $0x90] ss:$8 sps:$4 sm:$0xff]  }
   0xd   :  { %462 = vmatprep.subr.bf16.mxu1 %v846_v12  ;;  %v882_v37 = vld [vmem:[%s1217_s6 + $0x84] ss:$8 sps:$4 sm:$0xff]   ;;  %v884_v38 = vld [vmem:[%s1217_s6 + $0x80] ss:$8 sps:$4 sm:$0xff]   ;;  %15 = vst [vmem:[#allocation2] sm:$0x1] %v14_v39 }
   0xe   :  { %v43_v42 = vld [vmem:[%s1219_s1] sm:$0xff]  ;;  %v44_v45 = vld [vmem:[%s1219_s1 + $0x8] sm:$0xff]  ;;  %v153_v46 = vsub.s32 0, %v152_v41  ;;  %v45_v50 = vld [vmem:[%s1219_s1 + $0x10] sm:$0xff] }
   0xf   :  { %v149_v48 = vld [vmem:[%s1220_s4] sm:$0x3]  ;;  %v46_v56 = vld [vmem:[%s1219_s1 + $0x18] sm:$0xff]  ;;  %v48_v1 = vld [vmem:[%s1219_s1 + $0x28] sm:$0xff] }
  0x10   :  { %463 = vmatpush1.bf16.msra.mxu1 %v848_v14  ;;  %v158_v52 = vrot.slane %v149_v48, %v157_v43  ;;  %v154_v55 = vrot.slane %v149_v48, %v153_v46  ;;  %v47_v60 = vld [vmem:[%s1219_s1 + $0x20] sm:$0xff]  ;;  %v49_v8 = vld [vmem:[%s1219_s1 + $0x30] sm:$0xff]  ;;  %v893_v39 = vld [vmem:[%s1221_s7 + $0x58] sm:$0xff]  }
  0x11   :  { %464 = vmatprep.subr.bf16.mxu1 %v849_v15  ;;  %v50_v15 = vld [vmem:[%s1219_s1 + $0x38] sm:$0xff]  ;;  %v896_v43 = vld [vmem:[%s1221_s7 + $0x10] sm:$0xff]   ;;  %v899_v46 = vld [vmem:[%s1221_s7 + $0x40] sm:$0xff]  }
  0x12   :  { %747 = vmatmul.mubr.msk.bf16.gmra.mxu0 %vm81_vm0, %v836_v13  ;;  %v894_v41 = vld [vmem:[%s1221_s7 + $0x18] sm:$0xff]  }
  0x14   :  { %465 = vmatpush1.bf16.msra.mxu1 %v851_v16  ;;  %v748_v48 = vld [vmem:[#allocation2] ss:$0 sm:$0xff] }
  0x15   :  { %466 = vmatprep.subr.bf16.mxu1 %v852_v17 }
  0x18   :  { %467 = vmatpush1.bf16.msra.mxu1 %v854_v18 }
  0x19   :  { %468 = vmatprep.subr.bf16.mxu1 %v855_v19 }
  0x1c   :  { %469 = vmatpush1.bf16.msra.mxu1 %v857_v20 }
  0x1d   :  { %470 = vmatprep.subr.bf16.mxu1 %v858_v21 }
  0x20   :  { %471 = vmatpush1.bf16.msra.mxu1 %v860_v22 }
  0x21   :  { %472 = vmatprep.subr.bf16.mxu1 %v861_v23 }
  0x24   :  { %473 = vmatpush2.bf16.msra.mxu1 %v863_v24 }
  0x25   :  { %474 = vmatprep.subr.bf16.mxu1 %v864_v25 }
  0x28   :  { %475 = vmatpush2.bf16.msra.mxu1 %v866_v26 }
  0x29   :  { %476 = vmatprep.subr.bf16.mxu1 %v867_v27 }
  0x2c   :  { %477 = vmatpush2.bf16.msra.mxu1 %v869_v28 }
  0x2d   :  { %478 = vmatprep.subr.bf16.mxu1 %v870_v29 }
  0x30   :  { %479 = vmatpush2.bf16.msra.mxu1 %v872_v30 }
  0x31   :  { %480 = vmatprep.subr.bf16.mxu1 %v873_v31  ;;  %v885_v31 = vld [vmem:[%s1221_s7 + $0x78] sm:$0xff]  }
  0x32   :  { %798 = vmatprep.subr.bf16.mxu0 %v885_v31 }
  0x34   :  { %481 = vmatpush2.bf16.msra.mxu1 %v875_v32  ;;  %v886_v32 = vld [vmem:[%s1221_s7 + $0x38] sm:$0xff]  }
  0x35   :  { %482 = vmatprep.subr.bf16.mxu1 %v876_v33  ;;  %v887_v33 = vld [vmem:[%s1221_s7 + $0x70] sm:$0xff]   ;;  %799 = vmatpush3.bf16.msra.mxu0 %v886_v32 }
  0x36   :  { %800 = vmatprep.subr.bf16.mxu0 %v887_v33 }
  0x38   :  { %483 = vmatpush2.bf16.msra.mxu1 %v878_v34  ;;  %v888_v34 = vld [vmem:[%s1221_s7 + $0x30] sm:$0xff]  }
  0x39   :  { %484 = vmatprep.subr.bf16.mxu1 %v879_v35  ;;  %v889_v35 = vld [vmem:[%s1221_s7 + $0x68] sm:$0xff]   ;;  %801 = vmatpush3.bf16.msra.mxu0 %v888_v34 }
  0x3a   :  { %802 = vmatprep.subr.bf16.mxu0 %v889_v35 }
  0x3c   :  { %485 = vmatpush2.bf16.msra.mxu1 %v881_v36  ;;  %v890_v36 = vld [vmem:[%s1221_s7 + $0x28] sm:$0xff]  }
  0x3d   :  { %486 = vmatprep.subr.bf16.mxu1 %v882_v37  ;;  %v891_v37 = vld [vmem:[%s1221_s7 + $0x60] sm:$0xff]   ;;  %803 = vmatpush3.bf16.msra.mxu0 %v890_v36 }
  0x3e   :  { %804 = vmatprep.subr.bf16.mxu0 %v891_v37 }
  0x40   :  { %487 = vmatpush2.bf16.msra.mxu1 %v884_v38  ;;  %v892_v38 = vld [vmem:[%s1221_s7 + $0x20] sm:$0xff]  }
  0x41   :  { %805 = vmatpush3.bf16.msra.mxu0 %v892_v38 }
  0x42   :  { %806 = vmatprep.subr.bf16.mxu0 %v893_v39 }
  0x45   :  { %807 = vmatpush3.bf16.msra.mxu0 %v894_v41 }
  0xca   :  { %v122_v44 = vpop.f32.mrf.mxu0 }
  0xcb   :  { %v123_v47 = vadd.f32 %v122_v44, %v43_v42  ;;  %v895_v42 = vld [vmem:[%s1221_s7 + $0x50] sm:$0xff]   ;;  %v897_v44 = vld [vmem:[%s1221_s7 + $0x48] sm:$0xff]  }
  0xcc   :  { %v124_v49 = vpop.f32.mrf.mxu0  ;;  %808 = vmatprep.subr.bf16.mxu0 %v895_v42 }
  0xcd   :  { %v125_v51 = vadd.f32 %v124_v49, %v44_v45  ;;  %v141_v53 = vmax.f32 %v123_v47, 0.0  ;;  %809 = vmatpush3.bf16.msra.mxu0 %v896_v43  ;;  %v898_v45 = vld [vmem:[%s1221_s7 + $0x8] sm:$0xff]   ;;  %v900_v47 = vld [vmem:[%s1221_s7] sm:$0xff]  }
  0xce   :  { %v126_v54 = vpop.f32.mrf.mxu0  ;;  %810 = vmatprep.subr.bf16.mxu0 %v897_v44 }
  0xcf   :  { %v142_v57 = vmax.f32 %v125_v51, 0.0  ;;  %v127_v58 = vadd.f32 %v126_v54, %v45_v50  ;;  %v161_v2 = vmul.f32 %v154_v55, %v141_v53 }
  0xd0   :  { %v128_v59 = vpop.f32.mrf.mxu0 }
  0xd1   :  { %v143_v61 = vmax.f32 %v127_v58, 0.0  ;;  %v129_v62 = vadd.f32 %v128_v59, %v46_v56  ;;  %v162_v63 = vmul.f32 %v158_v52, %v142_v57  ;;  %811 = vmatpush3.bf16.msra.mxu0 %v898_v45 }
  0xd2   :  { %v132_v0 = vpop.f32.mrf.mxu0  ;;  %812 = vmatprep.subr.bf16.mxu0 %v899_v46 }
  0xd3   :  { %v144_v3 = vmax.f32 %v129_v62, 0.0  ;;  %v133_v4 = vadd.f32 %v132_v0, %v47_v60  ;;  %v163_v5 = vmul.f32 %v154_v55, %v143_v61  ;;  %v169_v7 = vadd.f32 %v162_v63, %v161_v2 }
  0xd4   :  { %v134_v6 = vpop.f32.mrf.mxu0  ;;  %v252_v13 = vpack.c.bf16 %v143_v61, %v141_v53 }
  0xd5   :  { %v164_v9 = vmul.f32 %v158_v52, %v144_v3  ;;  %v145_v10 = vmax.f32 %v133_v4, 0.0  ;;  %v135_v11 = vadd.f32 %v134_v6, %v48_v1  ;;  %v253_v12 = vpack.c.bf16 %v144_v3, %v142_v57  ;;  %170 = vadd.xlane.f32.xlu0 %v169_v7  ;;  %813 = vmatpush3.bf16.msra.mxu0 %v900_v47 }
  0xd6   :  { %v136_v14 = vpop.f32.mrf.mxu0 }
  0xd7   :  { %v146_v16 = vmax.f32 %v135_v11, 0.0  ;;  %v137_v17 = vadd.f32 %v136_v14, %v49_v8  ;;  %488 = vmatprep.mubr.bf16.mxu1 %v253_v12  ;;  %v172_v18 = vadd.f32 %v164_v9, %v163_v5  ;;  %v165_v22 = vmul.f32 %v154_v55, %v145_v10 }
  0xd8   :  { %v138_v19 = vpop.f32.mrf.mxu0  ;;  %489 = vmatmul.mubr.bf16.vlgmr.msra.gmra.mxu1 %v252_v13 }
  0xd9   :  { %v147_v20 = vmax.f32 %v137_v17, 0.0  ;;  %v139_v21 = vadd.f32 %v138_v19, %v50_v15  ;;  %v166_v23 = vmul.f32 %v158_v52, %v146_v16  ;;  %173 = vadd.xlane.f32.xlu0 %v172_v18 }
  0xdb   :  { %v148_v24 = vmax.f32 %v139_v21, 0.0  ;;  %v175_v25 = vadd.f32 %v166_v23, %v165_v22  ;;  %v167_v26 = vmul.f32 %v154_v55, %v147_v20  ;;  %v254_v29 = vpack.c.bf16 %v147_v20, %v145_v10 }
  0xdd   :  { %v168_v27 = vmul.f32 %v158_v52, %v148_v24  ;;  %v255_v28 = vpack.c.bf16 %v148_v24, %v146_v16  ;;  %176 = vadd.xlane.f32.xlu1 %v175_v25 }
  0xdf   :  { %498 = vmatprep.mubr.bf16.mxu1 %v255_v28  ;;  %v178_v30 = vadd.f32 %v168_v27, %v167_v26 }
  0xe0   :  { %499 = vmatmul.mubr.bf16.gmra.mxu1 %v254_v29 }
  0xe1   :  { %179 = vadd.xlane.f32.xlu1 %v178_v30 }
 0x15e   :  { %v171_v49 = vpop.xlane.xlu0 %170 }
 0x15f   :  { %v188_v50 = vadd.f32 %v748_v48, %v171_v49 }
 0x161   :  { %v196_v51 = vand.u32 2147483647, %v188_v50  ;;  %v192_v22 = vmax.f32 %v188_v50, 0.0 }
 0x162   :  { %v174_v52 = vpop.xlane.xlu0 %173 }
 0x163   :  { %v200_v53 = vsub.f32 0.0, %v196_v51  ;;  %v189_v54 = vadd.f32 %v748_v48, %v174_v52  ;;  %v289_v51 = vld [vmem:[%s1222_s2 + $0x8] sm:$0xff] }
 0x165   :  { %v204_v55 = vmul.f32 1.442695, %v200_v53  ;;  %v197_v56 = vand.u32 2147483647, %v189_v54  ;;  %v193_v32 = vmax.f32 %v189_v54, 0.0  ;;  %v290_v53 = vld [vmem:[%s1222_s2 + $0x10] sm:$0xff] }
 0x166   :  { %v177_v57 = vpop.xlane.xlu1 %176  ;;  %v288_v54 = vld [vmem:[%s1222_s2] sm:$0xff] }
 0x167   :  { %v1163_v58 = vadd.f32 %v748_v48, %v177_v57  ;;  %901 = vpow2.f32 %v204_v55  ;;  %v201_v59 = vsub.f32 0.0, %v197_v56  ;;  %v291_v56 = vld [vmem:[%s1222_s2 + $0x18] sm:$0xff] }
 0x169   :  { %v198_v60 = vand.u32 2147483647, %v1163_v58  ;;  %v206_v61 = vmul.f32 1.442695, %v201_v59  ;;  %v194_v39 = vmax.f32 %v1163_v58, 0.0 }
 0x16a   :  { %v180_v62 = vpop.xlane.xlu1 %179 }
 0x16b   :  { %v202_v63 = vsub.f32 0.0, %v198_v60  ;;  %v1166_v0 = vadd.f32 %v748_v48, %v180_v62  ;;  %903 = vpow2.f32 %v206_v61 }
 0x16d   :  { %v208_v1 = vmul.f32 1.442695, %v202_v63  ;;  %v199_v2 = vand.u32 2147483647, %v1166_v0  ;;  %v195_v47 = vmax.f32 %v1166_v0, 0.0 }
 0x16f   :  { %905 = vpow2.f32 %v208_v1  ;;  %v203_v3 = vsub.f32 0.0, %v199_v2 }
 0x171   :  { %v210_v4 = vmul.f32 1.442695, %v203_v3  ;;  %v293_v3 = vld [vmem:[%s1222_s2 + $0x28] sm:$0xff] }
 0x173   :  { %907 = vpow2.f32 %v210_v4 }
 0x174   :  { %v902_v5 = vpop.eup %901 }
 0x175   :  { %v212_v6 = vadd.f32 1.0, %v902_v5  ;;  %v215_v11 = vmul.f32 -0.5, %v902_v5  ;;  %v218_v16 = vand.u32 2147483647, %v902_v5 }
 0x177   :  { %909 = vlog2.f32 %v212_v6  ;;  %v216_v14 = vadd.f32 1.0, %v215_v11  ;;  %vm219_vm1 = vcmp.lt.f32.partialorder %v218_v16, 0.0004427343 }
 0x178   :  { %v904_v7 = vpop.eup %903 }
 0x179   :  { %v221_v8 = vadd.f32 1.0, %v904_v7  ;;  %v224_v15 = vmul.f32 -0.5, %v904_v7  ;;  %v217_v20 = vmul.f32 %v902_v5, %v216_v14  ;;  %v227_v23 = vand.u32 2147483647, %v904_v7  ;;  %v294_v5 = vld [vmem:[%s1222_s2 + $0x30] sm:$0xff] }
 0x17b   :  { %911 = vlog2.f32 %v221_v8  ;;  %v225_v21 = vadd.f32 1.0, %v224_v15  ;;  %vm228_vm2 = vcmp.lt.f32.partialorder %v227_v23, 0.0004427343  ;;  %v706_v23 = vand.u32 127, %v151_v40 }
 0x17c   :  { %v906_v9 = vpop.eup %905 }
 0x17d   :  { %v230_v10 = vadd.f32 1.0, %v906_v9  ;;  %v233_v18 = vmul.f32 -0.5, %v906_v9  ;;  %v226_v30 = vmul.f32 %v904_v7, %v225_v21  ;;  %v236_v31 = vand.u32 2147483647, %v906_v9  ;;  %v292_v7 = vld [vmem:[%s1222_s2 + $0x20] sm:$0xff] }
 0x17e   :  { %vm707_vm5 = vcmp.eq.s32.totalorder %v706_v23, 80 }
 0x17f   :  { %913 = vlog2.f32 %v230_v10  ;;  %v234_v27 = vadd.f32 1.0, %v233_v18  ;;  %vm237_vm3 = vcmp.lt.f32.partialorder %v236_v31, 0.0004427343  ;;  %v295_v10 = vld [vmem:[%s1222_s2 + $0x38] sm:$0xff] }
 0x180   :  { %v908_v12 = vpop.eup %907 }
 0x181   :  { %v239_v13 = vadd.f32 1.0, %v908_v12  ;;  %v242_v28 = vmul.f32 -0.5, %v908_v12  ;;  %v235_v37 = vmul.f32 %v906_v9, %v234_v27  ;;  %v245_v41 = vand.u32 2147483647, %v908_v12 }
 0x183   :  { %915 = vlog2.f32 %v239_v13  ;;  %v243_v38 = vadd.f32 1.0, %v242_v28  ;;  %vm246_vm4 = vcmp.lt.f32.partialorder %v245_v41, 0.0004427343 }
 0x184   :  { %v910_v17 = vpop.eup %909 }
 0x185   :  { %v214_v19 = vmul.f32 0.6931472, %v910_v17  ;;  %v244_v46 = vmul.f32 %v908_v12, %v243_v38 }
 0x187   :  { %v220_v24 = vsel %vm219_vm1, %v217_v20, %v214_v19 }
 0x188   :  { %v912_v25 = vpop.eup %911  ;;  %v248_v26 = vadd.f32 %v220_v24, %v192_v22  ;;  %v781_v24 = vld [vmem:[%s1223_s8] ss:$0 sm:$0xff] }
 0x189   :  { %v223_v29 = vmul.f32 0.6931472, %v912_v25 }
 0x18a   :  { %710 = vperm.xlu0 %827, %v248_v26  }
 0x18b   :  { %v229_v34 = vsel %vm228_vm2, %v226_v30, %v223_v29 }
 0x18c   :  { %v914_v33 = vpop.eup %913  ;;  %v249_v35 = vadd.f32 %v229_v34, %v193_v32 }
 0x18d   :  { %v232_v36 = vmul.f32 0.6931472, %v914_v33 }
 0x18e   :  { %715 = vperm.xlu1 %828, %v249_v35  }
 0x18f   :  { %v238_v42 = vsel %vm237_vm3, %v235_v37, %v232_v36 }
 0x190   :  { %v916_v43 = vpop.eup %915  ;;  %v250_v44 = vadd.f32 %v238_v42, %v194_v39 }
 0x191   :  { %v241_v45 = vmul.f32 0.6931472, %v916_v43 }
 0x192   :  { %720 = vperm.xlu1 %828, %v250_v44  }
 0x193   :  { %v247_v48 = vsel %vm246_vm4, %v244_v46, %v241_v45 }
 0x194   :  { %v251_v49 = vadd.f32 %v247_v48, %v195_v47 }
 0x196   :  { %725 = vperm.xlu1 %828, %v251_v49  }
 0x198   :  { %v490_v50 = vpop.f32.mrf.mxu1 }
 0x199   :  { %v491_v59 = vadd.f32 %v490_v50, %v288_v54 }
 0x19a   :  { %v492_v52 = vpop.f32.mrf.mxu1 }
 0x19b   :  { %v493_v57 = vadd.f32 %v492_v52, %v289_v51  ;;  %v509_v2 = vmax.f32 %v491_v59, 0.0 }
 0x19c   :  { %v494_v55 = vpop.f32.mrf.mxu1 }
 0x19d   :  { %v495_v58 = vadd.f32 %v494_v55, %v290_v53  ;;  %v510_v0 = vmax.f32 %v493_v57, 0.0 }
 0x19e   :  { %v496_v60 = vpop.f32.mrf.mxu1 }
 0x19f   :  { %v497_v61 = vadd.f32 %v496_v60, %v291_v56  ;;  %v511_v62 = vmax.f32 %v495_v58, 0.0 }
 0x1a0   :  { %v500_v63 = vpop.f32.mrf.mxu1 }
 0x1a1   :  { %v512_v1 = vmax.f32 %v497_v61, 0.0  ;;  %v517_v8 = vpack.c.bf16 %v511_v62, %v509_v2  ;;  %v501_v13 = vadd.f32 %v500_v63, %v292_v7 }
 0x1a2   :  { %v502_v4 = vpop.f32.mrf.mxu1 }
 0x1a3   :  { %v518_v6 = vpack.c.bf16 %v512_v1, %v510_v0  ;;  %v503_v11 = vadd.f32 %v502_v4, %v293_v3  ;;  %v513_v19 = vmax.f32 %v501_v13, 0.0 }
 0x1a4   :  { %v504_v9 = vpop.f32.mrf.mxu1 }
 0x1a5   :  { %v505_v12 = vadd.f32 %v504_v9, %v294_v5  ;;  %688 = vmatprep.mubr.bf16.mxu0 %v518_v6  ;;  %v514_v17 = vmax.f32 %v503_v11, 0.0 }
 0x1a6   :  { %v506_v14 = vpop.f32.mrf.mxu1  ;;  %689 = vmatmul.mubr.bf16.vlgmr.msra.gmra.mxu0 %v517_v8 }
 0x1a7   :  { %v507_v15 = vadd.f32 %v506_v14, %v295_v10  ;;  %v515_v16 = vmax.f32 %v505_v12, 0.0 }
 0x1a9   :  { %v516_v18 = vmax.f32 %v507_v15, 0.0  ;;  %v519_v21 = vpack.c.bf16 %v515_v16, %v513_v19 }
 0x1ab   :  { %v520_v20 = vpack.c.bf16 %v516_v18, %v514_v17 }
 0x1ad   :  { %696 = vmatprep.mubr.bf16.mxu0 %v520_v20 }
 0x1ae   :  { %697 = vmatmul.mubr.bf16.gmra.mxu0 %v519_v21 }
 0x205   :  { %v711_v28 = vpop.permute.xlu0 %710 }
 0x209   :  { %v716_v30 = vpop.permute.xlu1 %715 }
 0x20d   :  { %v721_v38 = vpop.permute.xlu1 %720 }
 0x211   :  { %v726_v46 = vpop.permute.xlu1 %725 }
 0x266   :  { %v814_v22 = vpop.f32.mrf.mxu0 }
 0x268   :  { %v815_v25 = vpop.f32.mrf.mxu0 }
 0x269   :  { %v816_v26 = vadd.f32 %v815_v25, %v814_v22 }
 0x26a   :  { %v817_v27 = vpop.f32.mrf.mxu0 }
 0x26b   :  { %v691_v29 = vadd.f32 %v816_v26, %v781_v24 }
 0x26c   :  { %v818_v31 = vpop.f32.mrf.mxu0 }
 0x26d   :  { %v728_v32 = vsel %vm707_vm5, %v711_v28, %v691_v29  ;;  %v819_v33 = vadd.f32 %v818_v31, %v817_v27 }
 0x26e   :  { %732 = vst [vmem:[%s1224_s9] sm:$0xff] %v728_v32  ;;  %v820_v40 = vpop.f32.mrf.mxu0 }
 0x26f   :  { %v694_v34 = vadd.f32 %v819_v33, %v781_v24 }
 0x270   :  { %v821_v35 = vpop.f32.mrf.mxu0 }
 0x271   :  { %v729_v36 = vsel %vm707_vm5, %v716_v30, %v694_v34  ;;  %v822_v37 = vadd.f32 %v821_v35, %v820_v40 }
 0x272   :  { %733 = vst [vmem:[%s1224_s9 + $0x8] sm:$0xff] %v729_v36  ;;  %v823_v39 = vpop.f32.mrf.mxu0 }
 0x273   :  { %v699_v41 = vadd.f32 %v822_v37, %v781_v24 }
 0x274   :  { %v824_v42 = vpop.f32.mrf.mxu0 }
 0x275   :  { %v730_v43 = vsel %vm707_vm5, %v721_v38, %v699_v41  ;;  %v825_v44 = vadd.f32 %v824_v42, %v823_v39 }
 0x276   :  { %734 = vst [vmem:[%s1224_s9 + $0x10] sm:$0xff] %v730_v43 }
 0x277   :  { %v702_v45 = vadd.f32 %v825_v44, %v781_v24 }
 0x279   :  { %v731_v47 = vsel %vm707_vm5, %v726_v46, %v702_v45 }
 0x27a   :  { %735 = vst [vmem:[%s1224_s9 + $0x18] sm:$0xff] %v731_v47 }

</bundles_post_ra>
